<compile_context>
chip_gen: v6e
topology: v6e:2x2x1
jax: 0.10.0
libtpu: 0.0.40
codegen_flags: <defaults>
</compile_context>

<pallas_src>
import math

import jax
import jax.numpy as jnp
from jax.experimental import pallas as pl
from jax.experimental.pallas import tpu as pltpu


def _pose_partial_sums_kernel(pred_ref, targ_ref, abs_out_ref, vo_out_ref):
    # pred_ref / targ_ref: (bn, L) f32 VMEM blocks; each row holds k whole samples of
    #   w = 6*T consecutive lanes (L = k*w, multiple of 128 except in the tiny-N path
    #   where it is zero-padded up to 128).
    # abs_out_ref / vo_out_ref: (1, 1, L) f32 per-block, per-lane partial sums.
    d = pred_ref[...] - targ_ref[...]
    # rolled[l] = d[(l + 6) % L]  ->  d[t+1] - d[t] == pred_vos - targ_vos per component.
    # Lanes where the roll crosses a sample boundary (or wraps) are masked in the wrapper.
    rolled = pltpu.roll(d, d.shape[1] - 6, axis=1)
    abs_sums = jnp.sum(jnp.abs(d), axis=0, keepdims=True)             # (1, L)
    vo_sums = jnp.sum(jnp.abs(rolled - d), axis=0, keepdims=True)     # (1, L)
    abs_out_ref[...] = abs_sums[None]                                 # (1, 1, L)
    vo_out_ref[...] = vo_sums[None]


def uncertainty_criterion(pred, targ, sax=0.0, saq=0.0, srx=0.0, srq=0.0,
                          *, block_bytes=2 * 1024 * 1024):
    """Forward pass of UncertainyCriterion (learn_log=True, dual_target=False).

    pred, targ: (N, T, 6) pose tensors (same convention as the PyTorch module).
    """
    n, t, d6 = pred.shape
    assert d6 == 6, "poses must have 6 components (3 translation + 3 rotation)"
    assert t >= 2, "need at least 2 time steps for the relative (vo) losses"
    w = 6 * t

    pred_f = pred.astype(jnp.float32)
    targ_f = targ.astype(jnp.float32)
    p2 = pred_f.reshape(n, w)          # free row-major reshape (no transpose)
    t2 = targ_f.reshape(n, w)

    # ---- fold k samples per row so the lane width is an exact multiple of 128 ----
    k_ideal = 64 // math.gcd(t, 64)    # smallest k with (k * w) % 128 == 0
    if n >= k_ideal:
        k = k_ideal
        used = k * w
        lane_w = used                  # multiple of 128, zero lane padding
    else:
        k = n                          # tiny batch: one folded row, pad lanes (tiny)
        used = k * w
        lane_w = -(-used // 128) * 128

    n_fold = (n // k) * k
    r = n_fold // k                    # folded rows available (>= 1)
    # NOTE: when n % k != 0 the prefix slice below may materialize a copy; the common
    # case (batch a multiple of the fold factor) is copy-free.
    pk = p2 if n_fold == n else p2[:n_fold]
    tk = t2 if n_fold == n else t2[:n_fold]
    pk = pk.reshape(r, used)
    tk = tk.reshape(r, used)
    if lane_w != used:                 # only in the tiny-N single-row path
        pk = jnp.pad(pk, ((0, 0), (0, lane_w - used)))
        tk = jnp.pad(tk, ((0, 0), (0, lane_w - used)))

    # ---- row-block size from a per-block byte budget (VMEM-safe on v5e/v6e/v7x) ----
    bn_max = max(8, (block_bytes // (lane_w * 4)) // 8 * 8)
    if r <= bn_max:
        bn, g = r, 1                   # single block equal to full array dims
    else:
        g0 = -(-r // bn_max)
        bn = max(8, (r // g0) // 8 * 8)
        g = r // bn                    # uncovered tail rows handled in JAX below

    abs_part, vo_part = pl.pallas_call(
        _pose_partial_sums_kernel,
        out_shape=(jax.ShapeDtypeStruct((g, 1, lane_w), jnp.float32),
                   jax.ShapeDtypeStruct((g, 1, lane_w), jnp.float32)),
        grid=(g,),
        in_specs=[pl.BlockSpec((bn, lane_w), lambda i: (i, 0)),
                  pl.BlockSpec((bn, lane_w), lambda i: (i, 0))],
        out_specs=(pl.BlockSpec((1, 1, lane_w), lambda i: (i, 0, 0)),
                   pl.BlockSpec((1, 1, lane_w), lambda i: (i, 0, 0))),
        compiler_params=pltpu.CompilerParams(
            dimension_semantics=("parallel",),   # per-block outputs -> megacore-safe
            vmem_limit_bytes=32 * 1024 * 1024),
    )(pk, tk)

    # ---- masked lane reduction of the (tiny) per-block partial sums, in JAX ----
    abs_lane = jnp.sum(abs_part, axis=(0, 1))                     # (L,)
    vo_lane = jnp.sum(vo_part, axis=(0, 1))                       # (L,)
    lane = jnp.arange(lane_w)
    tmask = (lane % 6) < 3                                        # translation comps
    valid = ((lane % w) < (w - 6)) & (lane < used)                # drop t==T-1 / pad

    t_sum = jnp.sum(jnp.where(tmask, abs_lane, 0.0))
    q_sum = jnp.sum(abs_lane) - t_sum
    vo_lane = jnp.where(valid, vo_lane, 0.0)
    vo_t_sum = jnp.sum(jnp.where(tmask, vo_lane, 0.0))
    vo_q_sum = jnp.sum(vo_lane) - vo_t_sum

    # ---- samples not covered by full kernel blocks: small contiguous JAX tail ----
    n_cov = g * bn * k
    if n_cov < n:
        pt, tt = pred_f[n_cov:], targ_f[n_cov:]
        ad = jnp.abs(pt - tt)
        t_sum = t_sum + jnp.sum(ad[..., :3])
        q_sum = q_sum + jnp.sum(ad[..., 3:])
        dv = jnp.abs((pt[:, 1:] - pt[:, :-1]) - (tt[:, 1:] - tt[:, :-1]))
        vo_t_sum = vo_t_sum + jnp.sum(dv[..., :3])
        vo_q_sum = vo_q_sum + jnp.sum(dv[..., 3:])

    abs_norm = jnp.float32(n * t * 3)
    vo_norm = jnp.float32(n * (t - 1) * 3)
    t_loss = t_sum / abs_norm
    q_loss = q_sum / abs_norm
    vo_t_loss = vo_t_sum / vo_norm
    vo_q_loss = vo_q_sum / vo_norm

    sax = jnp.asarray(sax, jnp.float32)
    saq = jnp.asarray(saq, jnp.float32)
    srx = jnp.asarray(srx, jnp.float32)
    srq = jnp.asarray(srq, jnp.float32)
    # learn_log=True branch of the PyTorch module.
    return (t_loss / (2.0 * jnp.exp(2.0 * sax)) + q_loss / (2.0 * jnp.exp(2.0 * saq))
            + vo_t_loss / (2.0 * jnp.exp(2.0 * srx)) + vo_q_loss / (2.0 * jnp.exp(2.0 * srq))
            + sax + saq + srx + srq)


def _reference(pred, targ, sax=0.0, saq=0.0, srx=0.0, srq=0.0):
    """Pure-JAX reference mirroring the PyTorch forward (learn_log=True)."""
    t_loss = jnp.mean(jnp.abs(pred[..., :3] - targ[..., :3]))
    q_loss = jnp.mean(jnp.abs(pred[..., 3:] - targ[..., 3:]))
    pv = pred[:, 1:, :] - pred[:, :-1, :]
    tv = targ[:, 1:, :] - targ[:, :-1, :]
    vo_t = jnp.mean(jnp.abs(pv[..., :3] - tv[..., :3]))
    vo_q = jnp.mean(jnp.abs(pv[..., 3:] - tv[..., 3:]))
    return (t_loss / (2.0 * jnp.exp(2.0 * sax)) + q_loss / (2.0 * jnp.exp(2.0 * saq))
            + vo_t / (2.0 * jnp.exp(2.0 * srx)) + vo_q / (2.0 * jnp.exp(2.0 * srq))
            + sax + saq + srx + srq)


if __name__ == "__main__":
    key = jax.random.PRNGKey(0)
    k1, k2, k3, k4, k5, k6 = jax.random.split(key, 6)

    # Main demo: N=16, T=8 -> fold factor 8, folded layout (2, 384), single block.
    pred = jax.random.normal(k1, (16, 8, 6), dtype=jnp.float32)
    targ = jax.random.normal(k2, (16, 8, 6), dtype=jnp.float32)
    loss = jax.block_until_ready(uncertainty_criterion(pred, targ))
    ref = _reference(pred, targ)
    assert jnp.allclose(loss, ref, rtol=1e-5, atol=1e-5), (loss, ref)

    # Tiled path + JAX tail: tiny block budget forces a 2-step grid and a remainder.
    pred2 = jax.random.normal(k3, (600, 10, 6), dtype=jnp.float32)
    targ2 = jax.random.normal(k4, (600, 10, 6), dtype=jnp.float32)
    loss2 = jax.block_until_ready(
        uncertainty_criterion(pred2, targ2, 0.1, -0.2, 0.3, -0.4,
                              block_bytes=8 * 1920 * 4))
    ref2 = _reference(pred2, targ2, 0.1, -0.2, 0.3, -0.4)
    assert jnp.allclose(loss2, ref2, rtol=1e-5, atol=1e-5), (loss2, ref2)

    # Tiny-batch path (N smaller than the fold factor -> single lane-padded row).
    pred3 = jax.random.normal(k5, (2, 8, 6), dtype=jnp.float32)
    targ3 = jax.random.normal(k6, (2, 8, 6), dtype=jnp.float32)
    loss3 = jax.block_until_ready(uncertainty_criterion(pred3, targ3))
    ref3 = _reference(pred3, targ3)
    assert jnp.allclose(loss3, ref3, rtol=1e-5, atol=1e-5), (loss3, ref3)

    print("KERNEL_OK")
</pallas_src>

<mosaic_0001>
module attributes {stable_mosaic.version = 11 : i64} {
  func.func @_pose_partial_sums_kernel(%arg0: i32, %arg1: memref<2x384xf32, #tpu.memory_space<vmem>>, %arg2: memref<2x384xf32, #tpu.memory_space<vmem>>, %arg3: memref<1x1x384xf32, #tpu.memory_space<vmem>>, %arg4: memref<1x1x384xf32, #tpu.memory_space<vmem>>) attributes {dimension_semantics = [#tpu.dimension_semantics<parallel>], iteration_bounds = array<i64: 1>, scalar_prefetch = 0 : i64, scratch_operands = 0 : i64, tpu.core_type = #tpu.core_type<tc>, window_params = [{transform_indices = @transform_0, window_bounds = array<i64: 2, 384>}, {transform_indices = @transform_1, window_bounds = array<i64: 2, 384>}, {transform_indices = @transform_2, window_bounds = array<i64: 1, 1, 384>}, {transform_indices = @transform_3, window_bounds = array<i64: 1, 1, 384>}]} {
    %c0 = arith.constant 0 : index
    %c0_0 = arith.constant 0 : index
    %0 = vector.load %arg1[%c0, %c0_0] : memref<2x384xf32, #tpu.memory_space<vmem>>, vector<2x384xf32>
    %c0_1 = arith.constant 0 : index
    %c0_2 = arith.constant 0 : index
    %1 = vector.load %arg2[%c0_1, %c0_2] : memref<2x384xf32, #tpu.memory_space<vmem>>, vector<2x384xf32>
    %2 = arith.subf %0, %1 : vector<2x384xf32>
    %c378_i32 = arith.constant 378 : i32
    %3 = tpu.dynamic_rotate %2 by %c378_i32 dim 1 : vector<2x384xf32>, i32 -> vector<2x384xf32>
    %4 = math.absf %2 : vector<2x384xf32>
    %cst = arith.constant dense<0.000000e+00> : vector<384xf32>
    %5 = vector.multi_reduction <add>, %4, %cst [0] : vector<2x384xf32> to vector<384xf32>
    %6 = vector.shape_cast %5 : vector<384xf32> to vector<1x384xf32>
    %7 = arith.subf %3, %2 : vector<2x384xf32>
    %8 = math.absf %7 : vector<2x384xf32>
    %cst_3 = arith.constant dense<0.000000e+00> : vector<384xf32>
    %9 = vector.multi_reduction <add>, %8, %cst_3 [0] : vector<2x384xf32> to vector<384xf32>
    %10 = vector.shape_cast %9 : vector<384xf32> to vector<1x384xf32>
    %11 = vector.shape_cast %6 : vector<1x384xf32> to vector<1x1x384xf32>
    %c0_4 = arith.constant 0 : index
    %c0_5 = arith.constant 0 : index
    %c0_6 = arith.constant 0 : index
    %12 = vector.load %arg3[%c0_4, %c0_5, %c0_6] : memref<1x1x384xf32, #tpu.memory_space<vmem>>, vector<1x1x384xf32>
    tpu.vector_store %arg3[%c0_4, %c0_5, %c0_6], %11 {strides = array<i32>} : memref<1x1x384xf32, #tpu.memory_space<vmem>>, vector<1x1x384xf32>,
    %13 = vector.shape_cast %10 : vector<1x384xf32> to vector<1x1x384xf32>
    %c0_7 = arith.constant 0 : index
    %c0_8 = arith.constant 0 : index
    %c0_9 = arith.constant 0 : index
    %14 = vector.load %arg4[%c0_7, %c0_8, %c0_9] : memref<1x1x384xf32, #tpu.memory_space<vmem>>, vector<1x1x384xf32>
    tpu.vector_store %arg4[%c0_7, %c0_8, %c0_9], %13 {strides = array<i32>} : memref<1x1x384xf32, #tpu.memory_space<vmem>>, vector<1x1x384xf32>,
    return
  }
  func.func @transform_0(%arg0: i32) -> (i32, i32) {
    %c0_i32 = arith.constant 0 : i32
    %c0_i32_0 = arith.constant 0 : i32
    return %arg0, %c0_i32 : i32, i32
  }
  func.func @transform_1(%arg0: i32) -> (i32, i32) {
    %c0_i32 = arith.constant 0 : i32
    %c0_i32_0 = arith.constant 0 : i32
    return %arg0, %c0_i32 : i32, i32
  }
  func.func @transform_2(%arg0: i32) -> (i32, i32, i32) {
    %c0_i32 = arith.constant 0 : i32
    %c0_i32_0 = arith.constant 0 : i32
    %c0_i32_1 = arith.constant 0 : i32
    return %arg0, %c0_i32, %c0_i32_0 : i32, i32, i32
  }
  func.func @transform_3(%arg0: i32) -> (i32, i32, i32) {
    %c0_i32 = arith.constant 0 : i32
    %c0_i32_0 = arith.constant 0 : i32
    %c0_i32_1 = arith.constant 0 : i32
    return %arg0, %c0_i32, %c0_i32_0 : i32, i32, i32
  }
}

</mosaic_0001>

<bundles_post_ra>
// kernel: tpu_custom_call.1
= control target key start
LH: loop header
LB: loop body
LE: loop exit
PB: predicated region body
PF: predicated region fallthrough
CT: control target
= control target key end

     0   :  { %9 = vsyncpa [#allocation3], 0  ;;  %s403_s0 = inlined_call_operand.hbm [shape: f32[2,384], index: 0, kind: input, shape index: {}]   ;;  %s404_s1 = inlined_call_operand.hbm [shape: f32[2,384], index: 1, kind: input, shape index: {}]   ;;  %s405_s2 = inlined_call_operand.hbm [shape: f32[1,1,384], index: 2, kind: output, shape index: {0}]   ;;  %s406_s3 = inlined_call_operand.hbm [shape: f32[1,1,384], index: 3, kind: output, shape index: {1}]  }
   0x1   :  { %10 = vsyncpa [#allocation6], 0 }
   0x2   :  { %11 = vsyncpa [#allocation4], 0 }
   0x3   :  { %12 = vsyncpa [#allocation9], 0  ;;  %s329_s12 = smov [#allocation2]   ;;  %s330_s14 = smov [#allocation5]  }
   0x4   :  { %s19_s13 = sshll.u32 %s329_s12, 4  ;;  %s29_s15 = sshll.u32 %s330_s14, 4  ;;  %s20_s13 = int_to_ptr.vmem [resolvable:$true] %s19_s13  ;;  %s30_s15 = int_to_ptr.vmem [resolvable:$true] %s29_s15 }
   0x5   :  { %s249_s16 = scalar_lea.vmem %s20_s13, 96  ;;  %p254_p1 = scmp.lt.s32.totalorder %s20_s13, %s20_s13 }
   0x6   :  { %p250_p0 = scmp.ne.s32.totalorder %s20_s13, %s249_s16  ;;  %p255_p2 = scmp.lt.s32.totalorder %s249_s16, %s249_s16 }
   0x8   :  { %p256_p3 = por %p255_p2, %p254_p1 }
   0xa   :  { %p257_p4 = pnand %p256_p3, %p250_p0 }
   0xc   :  { %260 = shalt.err (!%p257_p4)
}
   0xd   :  { %22 = dma.hbm_to_vmem [thread:$0]  %s403_s0, 96, %s20_s13, [#allocation3]  }
   0xe   :  { %s269_s19 = scalar_lea.vmem %s30_s15, 96  ;;  %p274_p6 = scmp.lt.s32.totalorder %s30_s15, %s30_s15 }
   0xf   :  { %p270_p5 = scmp.ne.s32.totalorder %s30_s15, %s269_s19  ;;  %p275_p7 = scmp.lt.s32.totalorder %s269_s19, %s269_s19 }
  0x11   :  { %p276_p8 = por %p275_p7, %p274_p6 }
  0x13   :  { %p277_p9 = pnand %p276_p8, %p270_p5 }
  0x15   :  { %280 = shalt.err (!%p277_p9)
}
  0x16   :  { %32 = dma.hbm_to_vmem [thread:$0]  %s404_s1, 96, %s30_s15, [#allocation6]  }
  0x17   :  { %321 = dma.done.wait [#allocation3], 96  }
  0x18   :  { %322 = vsyncadd [#allocation3], 4294967200 }
  0x19   :  { %323 = dma.done.wait [#allocation6], 96  }
  0x1a   :  { %324 = vsyncadd [#allocation6], 4294967200  ;;  %v47_v0 = vlaneseq  ;;  %v331_v1 = vmov 1983009808   ;;  %v39_v6 = vld [vmem:[#allocation2] sm:$0x3f] }
  0x1b   :  { %v45_v2 = vunpack.c.l.s4 %v331_v1  ;;  %v40_v7 = vld [vmem:[#allocation5] sm:$0x3f]  ;;  %s332_s0 = smov 122   ;;  %vm95_vm0 = vcmask 1041408   ;;  %v333_v25 = vmov 1966171168  }
  0x1c   :  { %v48_v3 = vshrl.u32 %v47_v0, 7  ;;  %v41_v8 = vsub.f32 %v39_v6, %v40_v7  ;;  %v149_v26 = vunpack.c.l.s4 %v333_v25  ;;  %s334_s1 = smov [#allocation7]   ;;  %vm379_vm1 = vcmp.lt.s32.totalorder %v47_v0, 384 }
  0x1d   :  { %v46_v4 = vunpack.c.0.s8 %v45_v2  ;;  %s210_s22 = sshll.u32 %s334_s1, 4  ;;  %s211_s22 = int_to_ptr.vmem [resolvable:$true] %s210_s22 }
  0x1e   :  { %v74_v10 = vand.u32 2147483647, %v41_v8  ;;  %v43_v11 = vcombine.high %v41_v8, %v41_v8  ;;  %v150_v33 = vunpack.c.0.s8 %v149_v26  ;;  %s281_s23 = scalar_lea.vmem %s211_s22, 48  ;;  %s285_s24 = scalar_lea.vmem %s211_s22, 64 }
  0x1f   :  { %v49_v5 = vsub.s32 %v46_v4, %v48_v3  ;;  %p282_p10 = scmp.ne.s32.totalorder %s211_s22, %s281_s23  ;;  %p286_p11 = scmp.lt.s32.totalorder %s211_s22, %s211_s22 }
  0x20   :  { %v76_v12 = vcombine.high %v74_v10, %v74_v10  ;;  %v374_v40 = vsub.s32 %v150_v33, %v48_v3  ;;  %p287_p12 = scmp.lt.s32.totalorder %s285_s24, %s281_s23 }
  0x21   :  { %v363_v9 = vrot.slane %v41_v8, %v49_v5  ;;  %v83_v13 = vrot.slane %v74_v10, %v49_v5  ;;  %v57_v14 = vrot.slane %v43_v11, %v49_v5 }
  0x22   :  { %v90_v16 = vrot.slane %v76_v12, %v49_v5  ;;  %p288_p13 = por %p287_p12, %p286_p11 }
  0x23   :  { %62 = vrot.lane.b32.xlu0 %v363_v9, %s332_s0  ;;  %v368_v15 = vcombine.high %v363_v9, %v363_v9  ;;  %v91_v17 = vcombine.high %v83_v13, %v83_v13  ;;  %66 = vrot.lane.b32.xlu1 %v57_v14, %s332_s0  ;;  %v96_v18 = vsel %vm95_vm0, %v83_v13, 0.0 }
  0x24   :  { %v97_v19 = vrot.slane %v96_v18, 4  ;;  %v110_v21 = vsel %vm95_vm0, %v90_v16, 0.0  ;;  %p289_p0 = pnand %p288_p13, %p282_p10 }
  0x25   :  { %v103_v20 = vsel %vm95_vm0, %v91_v17, 0.0  ;;  %v111_v24 = vrot.slane %v110_v21, 4 }
  0x26   :  { %v98_v22 = vadd.f32 %v97_v19, %v96_v18  ;;  %v104_v23 = vrot.slane %v103_v20, 4 }
  0x27   :  { %64 = vrot.lane.b32.xlu0 %v368_v15, %s332_s0  ;;  %v112_v29 = vadd.f32 %v111_v24, %v110_v21 }
  0x28   :  { %v99_v27 = vrot.slane %v98_v22, 2  ;;  %v105_v28 = vadd.f32 %v104_v23, %v103_v20 }
  0x29   :  { %v113_v32 = vrot.slane %v112_v29, 2 }
  0x2a   :  { %v100_v30 = vadd.f32 %v99_v27, %v98_v22  ;;  %v106_v31 = vrot.slane %v105_v28, 2 }
  0x2b   :  { %v114_v36 = vadd.f32 %v113_v32, %v112_v29 }
  0x2c   :  { %v101_v34 = vrot.slane %v100_v30, 1  ;;  %v107_v35 = vadd.f32 %v106_v31, %v105_v28 }
  0x2d   :  { %v115_v39 = vrot.slane %v114_v36, 1 }
  0x2e   :  { %v102_v37 = vadd.f32 %v101_v34, %v100_v30  ;;  %v108_v38 = vrot.slane %v107_v35, 1 }
  0x2f   :  { %v116_v42 = vadd.f32 %v115_v39, %v114_v36 }
  0x30   :  { %v109_v41 = vadd.f32 %v108_v38, %v107_v35 }
  0x31   :  { %v161_v44 = vrot.slane %v116_v42, %v374_v40 }
  0x32   :  { %v147_v43 = vcombine.low %v102_v37, %v109_v41 }
  0x34   :  { %v154_v45 = vrot.slane %v147_v43, %v374_v40 }
  0x36   :  { %v162_v46 = vcombine.low %v154_v45, %v161_v44 }
  0x38   :  { %v169_v48 = vrot.slane %v162_v46, %v374_v40 }
  0x3a   :  { %175 = vst.msk [vmem:[#allocation7] sm:$0x7] %vm379_vm1, %v169_v48 }
  0x3b   :  { %292 = shalt.err (!%p289_p0)
}
  0x3c   :  { %213 = dma.vmem_to_hbm [thread:$0]  %s211_s22, 48, %s405_s2, [#allocation4]   ;;  %v69_v49 = vand.u32 127, %v47_v0 }
  0x3d   :  { %s335_s2 = smov [#allocation8]  }
  0x3e   :  { %vm70_vm2 = vcmp.lt.s32.totalorder %v69_v49, 122  ;;  %s220_s27 = sshll.u32 %s335_s2, 4  ;;  %s221_s27 = int_to_ptr.vmem [resolvable:$true] %s220_s27 }
  0x3f   :  { %s301_s28 = scalar_lea.vmem %s221_s27, 48  ;;  %s305_s29 = scalar_lea.vmem %s221_s27, 64 }
  0x40   :  { %p302_p1 = scmp.ne.s32.totalorder %s221_s27, %s301_s28  ;;  %p306_p2 = scmp.lt.s32.totalorder %s221_s27, %s221_s27 }
  0x41   :  { %p307_p3 = scmp.lt.s32.totalorder %s305_s29, %s301_s28 }
  0x43   :  { %p308_p4 = por %p307_p3, %p306_p2 }
  0x45   :  { %p309_p5 = pnand %p308_p4, %p302_p1 }
  0x95   :  { %v63_v50 = vpop.permute.xlu0 %62  ;;  %v67_v51 = vpop.permute.xlu1 %66 }
  0x96   :  { %v73_v52 = vsel %vm70_vm2, %v67_v51, %v63_v50 }
  0x97   :  { %v119_v53 = vsub.f32 %v73_v52, %v57_v14 }
  0x99   :  { %v65_v54 = vpop.permute.xlu0 %64  ;;  %v122_v57 = vand.u32 2147483647, %v119_v53 }
  0x9a   :  { %v71_v55 = vsel %vm70_vm2, %v65_v54, %v67_v51  ;;  %v72_v56 = vsel %vm70_vm2, %v63_v50, %v65_v54 }
  0x9b   :  { %v117_v58 = vsub.f32 %v72_v56, %v363_v9  ;;  %v118_v59 = vsub.f32 %v71_v55, %v368_v15  ;;  %v137_v60 = vsel %vm95_vm0, %v122_v57, 0.0 }
  0x9c   :  { %v138_v63 = vrot.slane %v137_v60, 4 }
  0x9d   :  { %v120_v61 = vand.u32 2147483647, %v117_v58  ;;  %v121_v62 = vand.u32 2147483647, %v118_v59 }
  0x9e   :  { %v139_v2 = vadd.f32 %v138_v63, %v137_v60 }
  0x9f   :  { %v123_v0 = vsel %vm95_vm0, %v120_v61, 0.0  ;;  %v130_v1 = vsel %vm95_vm0, %v121_v62, 0.0 }
  0xa0   :  { %v124_v3 = vrot.slane %v123_v0, 4  ;;  %v131_v4 = vrot.slane %v130_v1, 4  ;;  %v140_v5 = vrot.slane %v139_v2, 2 }
  0xa2   :  { %v125_v6 = vadd.f32 %v124_v3, %v123_v0  ;;  %v132_v7 = vadd.f32 %v131_v4, %v130_v1  ;;  %v141_v8 = vadd.f32 %v140_v5, %v139_v2 }
  0xa4   :  { %v126_v10 = vrot.slane %v125_v6, 2  ;;  %v133_v9 = vrot.slane %v132_v7, 2  ;;  %v142_v11 = vrot.slane %v141_v8, 1 }
  0xa6   :  { %v127_v12 = vadd.f32 %v126_v10, %v125_v6  ;;  %v134_v13 = vadd.f32 %v133_v9, %v132_v7  ;;  %v143_v16 = vadd.f32 %v142_v11, %v141_v8 }
  0xa8   :  { %v128_v14 = vrot.slane %v127_v12, 1  ;;  %v135_v15 = vrot.slane %v134_v13, 1  ;;  %v193_v21 = vrot.slane %v143_v16, %v374_v40 }
  0xaa   :  { %v129_v17 = vadd.f32 %v128_v14, %v127_v12  ;;  %v136_v18 = vadd.f32 %v135_v15, %v134_v13 }
  0xac   :  { %v179_v19 = vcombine.low %v129_v17, %v136_v18 }
  0xae   :  { %v186_v20 = vrot.slane %v179_v19, %v374_v40 }
  0xb0   :  { %v194_v22 = vcombine.low %v186_v20, %v193_v21 }
  0xb2   :  { %v201_v23 = vrot.slane %v194_v22, %v374_v40 }
  0xb4   :  { %203 = vst.msk [vmem:[#allocation8] sm:$0x7] %vm379_vm1, %v201_v23 }
  0xb5   :  { %312 = shalt.err (!%p309_p5)
}
  0xb6   :  { %223 = dma.vmem_to_hbm [thread:$0]  %s221_s27, 48, %s406_s3, [#allocation9]  }
  0xb7   :  { %325 = dma.done.wait [#allocation4], 48  }
  0xb8   :  { %326 = vsyncadd [#allocation4], 4294967248 }
  0xb9   :  { %327 = dma.done.wait [#allocation9], 48  }
  0xba   :  { %328 = vsyncadd [#allocation9], 4294967248 }
  0xbb   :  { %230 = vsyncpa [#allocation3], 1 }
  0xbc   :  { %231 = vsyncpa [#allocation6], 1 }
  0xbd   :  { %232 = vsyncpa [#allocation4], 1 }
  0xbe   :  { %233 = vsyncpa [#allocation9], 1 }

</bundles_post_ra>
